<compile_context>
chip_gen: v7x
topology: tpu7x:2x2x1
jax: 0.10.0
libtpu: 0.0.40
codegen_flags: <defaults>
</compile_context>

<pallas_src>
import functools

import jax
import jax.numpy as jnp
from jax.experimental import pallas as pl
from jax.experimental.pallas import tpu as pltpu


# ---------------------------------------------------------------------------
# Kernel (specialized at trace time by static has_pm / has_plv flags)
# ---------------------------------------------------------------------------
def _kl_kernel(w_ref, *refs, inv_n, kl_min, has_pm, has_plv):
    """Elementwise KL + full mean-reduction + clamp + runtime-weight scale.

    refs = (qm_ref, qlv_ref, [pm_ref], [plv_ref], out_ref)
    w_ref is a (1,) f32 SMEM scalar; out_ref is a (1, 1) f32 SMEM scalar.
    Inputs were cast to f32 once in the wrapper (v5e has no bf16 VPU/EUP).
    """
    out_ref = refs[-1]
    qm = refs[0][...]
    qlv = refs[1][...]
    i = 2
    pm = None
    plv = None
    if has_pm:
        pm = refs[i][...]
        i += 1
    if has_plv:
        plv = refs[i][...]
        i += 1

    if not has_pm and not has_plv:
        # KL(q || N(0, I))
        kl = -0.5 * (1.0 + qlv - qm * qm - jnp.exp(qlv))
    else:
        diff = qm - pm if has_pm else qm          # missing p_mean   -> pm = 0
        if has_plv:
            # exp() goes to the EUP (own VLIW slot) -> effectively free filler.
            kl = 0.5 * (plv - qlv + (jnp.exp(qlv) + diff * diff)
                        * jnp.exp(-plv) - 1.0)
        else:                                      # missing p_logvar -> plv = 0
            kl = 0.5 * (-qlv + jnp.exp(qlv) + diff * diff - 1.0)

    # Zero-padded elements contribute exactly 0 to every branch above, so the
    # sum over the padded block equals the sum over the true elements.
    loss = jnp.maximum(jnp.sum(kl) * inv_n, kl_min)
    out_ref[0, 0] = w_ref[0] * loss


# ---------------------------------------------------------------------------
# Wrapper (pad/reshape + pallas_call), jitted so annealed weight is traced
# ---------------------------------------------------------------------------
def _pack_lane_dense(x):
    """Flatten to f32 and zero-pad so the last dim is a dense multiple of 128."""
    flat = jnp.ravel(x).astype(jnp.float32)
    n = flat.shape[0]
    n_pad = ((n + 127) // 128) * 128
    if n_pad != n:
        flat = jnp.pad(flat, (0, n_pad - n))
    return flat.reshape(n_pad // 128, 128)


@functools.partial(jax.jit, static_argnames=("kl_min",))
def _kl_loss_call(weight, q_mean, q_logvar, p_mean, p_logvar, *, kl_min):
    has_pm = p_mean is not None
    has_plv = p_logvar is not None

    n_true = q_mean.size                 # static (shape-derived)
    inv_n = 1.0 / float(n_true)

    vmem_inputs = [_pack_lane_dense(q_mean), _pack_lane_dense(q_logvar)]
    if has_pm:
        vmem_inputs.append(_pack_lane_dense(p_mean))
    if has_plv:
        vmem_inputs.append(_pack_lane_dense(p_logvar))

    w = jnp.asarray(weight, dtype=jnp.float32).reshape((1,))

    kernel = functools.partial(
        _kl_kernel, inv_n=inv_n, kl_min=float(kl_min),
        has_pm=has_pm, has_plv=has_plv,
    )

    out = pl.pallas_call(
        kernel,
        out_shape=jax.ShapeDtypeStruct((1, 1), jnp.float32),
        in_specs=[pl.BlockSpec(memory_space=pltpu.SMEM)]            # weight
                 + [pl.BlockSpec(memory_space=pltpu.VMEM)] * len(vmem_inputs),
        out_specs=pl.BlockSpec(memory_space=pltpu.SMEM),            # scalar out
    )(w, *vmem_inputs)
    return out[0, 0]


# ---------------------------------------------------------------------------
# Module-equivalent wrapper
# ---------------------------------------------------------------------------
class KLLoss:
    """JAX/Pallas port of the PyTorch KLLoss module (forward pass only)."""

    def __init__(self, kl_weight=1.0, eta_min=0.01, R=0.99995, kl_min=0.0):
        self.kl_weight = float(kl_weight)
        self.eta_min = float(eta_min)
        self.R = float(R)
        self.kl_min = float(kl_min)
        # register_buffer('factor', 1 - eta_min) — deterministic init.
        self.factor = 1.0 - self.eta_min
        self.training = False  # like module.eval(); set True to anneal factor.

    def reset_parameters(self):
        self.factor = 1.0 - self.eta_min

    @property
    def weight(self):
        eta = 1.0 - self.factor
        w = self.kl_weight * eta
        if self.training:
            self.factor *= self.R
        return w

    def __call__(self, q_mean, q_logvar, p_mean=None, p_logvar=None):
        if self.kl_weight == 0:
            return jnp.float32(0.0)
        # The annealed weight is fed as a runtime scalar (SMEM) -> the compiled
        # kernel is reused across all training steps; no per-step recompile.
        weight = jnp.float32(self.weight)
        return _kl_loss_call(weight, q_mean, q_logvar, p_mean, p_logvar,
                             kl_min=self.kl_min)


# ---------------------------------------------------------------------------
# Reference (pure JAX) for sanity checking
# ---------------------------------------------------------------------------
def _ref_loss(weight, kl_min, q_mean, q_logvar, p_mean=None, p_logvar=None):
    if p_mean is None and p_logvar is None:
        kl = -0.5 * (1.0 + q_logvar - q_mean ** 2 - jnp.exp(q_logvar))
    else:
        pm = jnp.zeros_like(q_mean) if p_mean is None else p_mean
        plv = jnp.zeros_like(q_logvar) if p_logvar is None else p_logvar
        kl = 0.5 * (plv - q_logvar
                    + (jnp.exp(q_logvar) + (q_mean - pm) ** 2) / jnp.exp(plv)
                    - 1.0)
    return weight * jnp.clip(jnp.mean(kl), kl_min, None)


if __name__ == "__main__":
    key = jax.random.PRNGKey(0)
    k1, k2, k3, k4 = jax.random.split(key, 4)

    batch, z_dim = 2, 32  # small latent-code shapes implied by the module
    q_mean = jax.random.normal(k1, (batch, z_dim), dtype=jnp.float32)
    q_logvar = 0.1 * jax.random.normal(k2, (batch, z_dim), dtype=jnp.float32)
    p_mean = jax.random.normal(k3, (batch, z_dim), dtype=jnp.float32)
    p_logvar = 0.1 * jax.random.normal(k4, (batch, z_dim), dtype=jnp.float32)

    kl_loss = KLLoss()

    # All four prior configurations (exercises every kernel specialization).
    cases = [
        (q_mean, q_logvar, None, None),          # standard-normal prior
        (q_mean, q_logvar, p_mean, p_logvar),    # full general prior
        (q_mean, q_logvar, p_mean, None),        # p_logvar omitted
        (q_mean, q_logvar, None, p_logvar),      # p_mean omitted
    ]
    for args in cases:
        w_expected = kl_loss.kl_weight * (1.0 - kl_loss.factor)
        out = kl_loss(*args)
        jax.block_until_ready(out)
        ref = _ref_loss(w_expected, kl_loss.kl_min, *args)
        assert jnp.allclose(out, ref, rtol=1e-5, atol=1e-6), (out, ref)

    # Training-mode annealing: weight changes every step but stays a runtime
    # scalar, so the same compiled kernel is reused (no recompiles).
    kl_loss.training = True
    for _ in range(3):
        w_expected = kl_loss.kl_weight * (1.0 - kl_loss.factor)
        out = kl_loss(q_mean, q_logvar)
        jax.block_until_ready(out)
        ref = _ref_loss(w_expected, kl_loss.kl_min, q_mean, q_logvar)
        assert jnp.allclose(out, ref, rtol=1e-5, atol=1e-6), (out, ref)
    kl_loss.training = False

    print("KERNEL_OK")
</pallas_src>

<mosaic_0001>
module attributes {stable_mosaic.version = 11 : i64} {
  func.func @_kl_kernel(%arg0: memref<1xf32, #tpu.memory_space<smem>>, %arg1: memref<1x128xf32, #tpu.memory_space<vmem>>, %arg2: memref<1x128xf32, #tpu.memory_space<vmem>>, %arg3: memref<1x1xf32, #tpu.memory_space<smem>>) attributes {dimension_semantics = [], scalar_prefetch = 0 : i64, scratch_operands = 0 : i64, tpu.core_type = #tpu.core_type<tc>} {
    %c0 = arith.constant 0 : index
    %c0_0 = arith.constant 0 : index
    %0 = vector.load %arg1[%c0, %c0_0] : memref<1x128xf32, #tpu.memory_space<vmem>>, vector<1x128xf32>
    %c0_1 = arith.constant 0 : index
    %c0_2 = arith.constant 0 : index
    %1 = vector.load %arg2[%c0_1, %c0_2] : memref<1x128xf32, #tpu.memory_space<vmem>>, vector<1x128xf32>
    %cst = arith.constant 1.000000e+00 : f32
    %2 = vector.broadcast %cst : f32 to vector<1x128xf32>
    %3 = arith.addf %2, %1 : vector<1x128xf32>
    %4 = arith.mulf %0, %0 : vector<1x128xf32>
    %5 = arith.subf %3, %4 : vector<1x128xf32>
    %6 = math.exp %1 : vector<1x128xf32>
    %7 = arith.subf %5, %6 : vector<1x128xf32>
    %cst_3 = arith.constant -5.000000e-01 : f32
    %8 = vector.broadcast %cst_3 : f32 to vector<1x128xf32>
    %9 = arith.mulf %8, %7 : vector<1x128xf32>
    %10 = vector.shape_cast %9 : vector<1x128xf32> to vector<1x1x128xf32>
    %cst_4 = arith.constant dense<0.000000e+00> : vector<1xf32>
    %11 = vector.multi_reduction <add>, %10, %cst_4 [1, 2] : vector<1x1x128xf32> to vector<1xf32>
    %12 = vector.shape_cast %11 : vector<1xf32> to vector<1x1x1xf32>
    %13 = vector.extract %12[0, 0, 0] : f32 from vector<1x1x1xf32>
    %cst_5 = arith.constant 1.562500e-02 : f32
    %14 = arith.mulf %13, %cst_5 : f32
    %cst_6 = arith.constant 0.000000e+00 : f32
    %15 = arith.maximumf %14, %cst_6 : f32
    %c0_7 = arith.constant 0 : index
    %16 = memref.load %arg0[%c0_7] : memref<1xf32, #tpu.memory_space<smem>>
    %17 = arith.mulf %16, %15 : f32
    %c0_8 = arith.constant 0 : index
    %c0_9 = arith.constant 0 : index
    %18 = memref.load %arg3[%c0_8, %c0_9] : memref<1x1xf32, #tpu.memory_space<smem>>
    memref.store %17, %arg3[%c0_8, %c0_9] : memref<1x1xf32, #tpu.memory_space<smem>>
    return
  }
}

</mosaic_0001>

<bundles_post_ra>
// kernel: _kl_loss_call.1
= control target key start
LH: loop header
LB: loop body
LE: loop exit
PB: predicated region body
PF: predicated region fallthrough
CT: control target
= control target key end

     0   :  { %s116_s0 = inlined_call_operand.<no memory space> [shape: f32[1], index: 0, kind: input, shape index: {}]   ;;  %s117_s1 = inlined_call_operand.vmem [shape: f32[1,128], index: 1, kind: input, shape index: {}]   ;;  %s118_s2 = inlined_call_operand.vmem [shape: f32[1,128], index: 2, kind: input, shape index: {}]   ;;  %s119_s3 = inlined_call_operand.hbm [shape: f32[1,1], index: 3, kind: output, shape index: {}]  }
   0x1   :  { %v17_v0 = vld [vmem:[%s118_s2] sm:$0x1] }
   0x2   :  { %v21_v1 = vmul.f32 1.442695, %v17_v0 }
   0x3   :  { %9 = vsyncpa [#allocation4], 0  ;;  %v16_v2 = vld [vmem:[%s117_s1] sm:$0x1]  ;;  %v18_v3 = vadd.f32 1.0, %v17_v0  ;;  %vm25_vm0 = vcmask 1040384  }
   0x4   :  { %59 = vpow2.f32 %v21_v1  ;;  %v19_v4 = vmul.f32 %v16_v2, %v16_v2  ;;  %s73_s16 = smov 0.0   ;;  %s61_s23 = scalar_lea.hbm %s119_s3, 16 }
   0x5   :  { %p62_p0 = scmp.ne.s32.totalorder %s119_s3, %s61_s23  ;;  %p65_p1 = scmp.lt.u32.totalorder %s61_s23, %s119_s3 }
   0x6   :  { %v20_v5 = vsub.f32 %v18_v3, %v19_v4 }
   0x7   :  { %p67_p2 = pnand %p65_p1, %p62_p0 }
   0xe   :  { %v60_v6 = vpop.eup %59 }
   0xf   :  { %v23_v7 = vsub.f32 %v20_v5, %v60_v6 }
  0x11   :  { %v24_v8 = vmul.f32 -0.5, %v23_v7 }
  0x13   :  { %v26_v9 = vsel %vm25_vm0, %v24_v8, 0.0 }
  0x14   :  { %27 = vadd.xlane.f32.xlu0 %v26_v9 }
  0xa1   :  { %v28_v10 = vpop.xlane.xlu0 %27 }
  0xa2   :  { %v29_v11 = vrot.slane %v28_v10, 4 }
  0xa4   :  { %v30_v12 = vadd.f32 %v29_v11, %v28_v10 }
  0xa6   :  { %v31_v13 = vrot.slane %v30_v12, 2 }
  0xa8   :  { %v32_v14 = vadd.f32 %v31_v13, %v30_v12 }
  0xaa   :  { %v33_v15 = vrot.slane %v32_v14, 1 }
  0xac   :  { %v34_v16 = vadd.f32 %v33_v15, %v32_v14 }
  0xae   :  { %55 = vpush %v34_v16 }
  0xdf   :  { %s56_s2 = spop %55 }
  0xe0   :  { %s36_s1 = smul.f32 0.015625, %s56_s2 }
  0xe2   :  { %s37_s17 = smax.f32 %s73_s16, %s36_s1 }
  0xe3   :  { %s39_s20 = smul.f32 %s37_s17, %s116_s0 }
  0xe5   :  { %41 = sst [smem:[#allocation3]] %s39_s20 }
  0xe6   :  { %70 = shalt.err (!%p67_p2)
}
  0xe7   :  { %s74_s28 = smov [#allocation3]  }
  0xe8   :  { %49 = dma.smem_to_hbm %s74_s28, 16, %s119_s3, [#allocation4]  }
  0xe9   :  { %71 = dma.done.wait [#allocation4], 16  }
  0xea   :  { %72 = vsyncadd [#allocation4], 4294967280 }
  0xeb   :  { %53 = sfence }
  0xec   :  { %54 = vsyncpa [#allocation4], 1 }

</bundles_post_ra>
